<compile_context>
chip_gen: v7x
topology: tpu7x:2x2x1
jax: 0.10.0
libtpu: 0.0.40
codegen_flags: <defaults>
</compile_context>

<pallas_src>
import jax
import jax.numpy as jnp
from jax.experimental import pallas as pl
from jax.experimental.pallas import tpu as pltpu


def _pick_batch_block(N, L, target_cols=512):
    """Batch elements folded into one grid step (matmul lane dim = nb*L)."""
    nb = max(1, min(N, -(-target_cols // L)))
    while N % nb:
        nb -= 1
    # Keep >= 2 grid steps when possible so dual-TensorCore chips (v7x) get work.
    if N // nb < 2 and N >= 2:
        nb2 = N // 2
        while N % nb2:
            nb2 -= 1
        nb = max(1, nb2)
    return nb


def _make_fused_tcn_kernel(L, nb, level_info, n_weight_refs):
    """level_info: tuple of (cin, cout, active_shifts, has_downsample) per level.

    Kernel ref order: x_ref, <n_weight_refs weight refs>, final_ref, d_ref.
    """
    nbl = nb * L
    num_levels = len(level_info)

    def kernel(*refs):
        x_ref = refs[0]
        w_refs = refs[1:1 + n_weight_refs]
        final_ref = refs[1 + n_weight_refs]
        d_ref = refs[2 + n_weight_refs]

        # Per-column time index within each sequence (hoisted; shared by all taps).
        col_t = jax.lax.broadcasted_iota(jnp.int32, (1, nbl), 1) % L

        def shift_right_causal(xb, s):
            # out[:, c] = xb[:, c - s] if (c % L) >= s else 0  (no cross-sequence bleed)
            if s == 0:
                return xb
            if nbl % 128 == 0:
                shifted = pltpu.roll(xb, shift=s, axis=1)      # XLU slot, no copy chain
            else:
                shifted = jnp.concatenate(
                    [jnp.zeros((xb.shape[0], s), xb.dtype), xb[:, :nbl - s]], axis=1)
            return jnp.where(col_t >= s, shifted, 0).astype(xb.dtype)

        def causal_conv(xb, wflat, bias, shifts):
            # xb: (C, nb*L) bf16; wflat: (Cout, n_act*C) bf16; bias: (Cout, 1) f32
            taps = [shift_right_causal(xb, s) for s in shifts]
            im2col = taps[0] if len(taps) == 1 else jnp.concatenate(taps, axis=0)
            return jnp.dot(wflat, im2col, preferred_element_type=jnp.float32) + bias

        x = x_ref[0].astype(jnp.float32)                        # (Cin, nb*L), f32 residual path
        wi = 0
        for li, (_cin, _cout, shifts, has_ds) in enumerate(level_info):
            w1 = w_refs[wi][...]
            b1 = w_refs[wi + 1][...]
            w2 = w_refs[wi + 2][...]
            b2 = w_refs[wi + 3][...]
            wi += 4

            xb = x.astype(jnp.bfloat16)

            # conv1 -> chomp -> ReLU -> dropout(identity, eval mode)
            h1 = jnp.maximum(causal_conv(xb, w1, b1, shifts), 0.0)
            # conv2 -> chomp -> ReLU -> dropout(identity, eval mode)
            h2 = jnp.maximum(causal_conv(h1.astype(jnp.bfloat16), w2, b2, shifts), 0.0)

            # residual (+ optional 1x1 downsample) and final ReLU
            if has_ds:
                wd = w_refs[wi][...]
                bd = w_refs[wi + 1][...]
                wi += 2
                res = jnp.dot(wd, xb, preferred_element_type=jnp.float32) + bd
            else:
                res = x

            y = jnp.maximum(h2 + res, 0.0)                      # (Cout, nb*L) f32

            store_d = (li < num_levels - 1) or (num_levels == 1)
            is_last = (li == num_levels - 1)
            for b in range(nb):
                yb = y[:, b * L:(b + 1) * L]
                if store_d:
                    d_ref[li, b] = yb.astype(d_ref.dtype)
                if is_last:
                    final_ref[b] = yb.astype(final_ref.dtype)
            x = y                                               # feeds next level (stays in VMEM)

    return kernel


def _estimate_vmem_bytes(level_info, Cin, L, nb, nl, flat_w):
    nbl = nb * L
    nd = max(1, nl - 1)
    cd = level_info[0][1]
    c_last = level_info[-1][1]
    in_b = Cin * nbl * 4
    out_b = nd * nb * cd * L * 4 + nb * c_last * L * 4
    w_b = sum(int(a.size) * a.dtype.itemsize for a in flat_w)
    max_kc = max(len(sh) * ci for (ci, _, sh, _) in level_info)
    max_co = max(co for (_, co, _, _) in level_info)
    # im2col (bf16) + a few f32 activation-sized temporaries per level
    temp_b = 2 * max_kc * nbl * 2 + 6 * max_co * nbl * 4
    est = 2 * (in_b + out_b + w_b) + temp_b                     # I/O double-buffered
    return int(min(56 * 2 ** 20, max(16 * 2 ** 20, 2 * est)))   # 56 MiB cap fits v7x


def temporal_conv_net_forward(x_ncl, params_list, kernel_size):
    """Fused TCN forward. x_ncl: (N, Cin, L) f32 (PyTorch NCL layout).

    Returns (final_d, d): final_d (N, C_last, L); d (max(1, num_levels-1), N, C, L).
    """
    N, Cin, L = x_ncl.shape
    K = kernel_size
    nl = len(params_list)
    nb = _pick_batch_block(N, L)
    nbl = nb * L
    G = N // nb

    level_info = []
    flat_w, w_specs = [], []
    cin = Cin
    for i, p in enumerate(params_list):
        w1, w2 = p["w1"], p["w2"]          # (Cout, Cin, K) / (Cout, Cout, K), weight_norm folded
        cout = w1.shape[0]
        dil = 2 ** i
        shifts_all = [(K - 1 - j) * dil for j in range(K)]
        active = [j for j in range(K) if shifts_all[j] < L]     # prune all-zero taps
        shifts = tuple(shifts_all[j] for j in active)
        w1f = jnp.concatenate([w1[:, :, j] for j in active], axis=1).astype(jnp.bfloat16)
        w2f = jnp.concatenate([w2[:, :, j] for j in active], axis=1).astype(jnp.bfloat16)
        b1 = p["b1"].reshape(cout, 1).astype(jnp.float32)
        b2 = p["b2"].reshape(cout, 1).astype(jnp.float32)
        has_ds = "wd" in p
        arrs = [w1f, b1, w2f, b2]
        if has_ds:
            arrs += [p["wd"][:, :, 0].astype(jnp.bfloat16),
                     p["bd"].reshape(cout, 1).astype(jnp.float32)]
        for a in arrs:
            flat_w.append(a)
            # Whole (tiny) weight arrays, constant block index -> stay resident.
            w_specs.append(pl.BlockSpec(a.shape, lambda n: (0, 0)))
        level_info.append((cin, cout, shifts, has_ds))
        cin = cout
    level_info = tuple(level_info)

    c_last = level_info[-1][1]
    nd = max(1, nl - 1)
    cd = level_info[0][1]
    for (_, co, _, _) in level_info[:nd]:
        assert co == cd, "levels stacked into d must share one channel width"

    # Channel-major, batch-folded input view (layout plumbing on the small input
    # only; outputs never round-trip HBM): x3[g, c, b*L + t] = x[g*nb + b, c, t]
    x3 = x_ncl.reshape(G, nb, Cin, L).transpose(0, 2, 1, 3).reshape(G, Cin, nbl)

    kernel = _make_fused_tcn_kernel(L, nb, level_info, len(flat_w))

    out_shape = (jax.ShapeDtypeStruct((N, c_last, L), jnp.float32),
                 jax.ShapeDtypeStruct((nd, N, cd, L), jnp.float32))
    out_specs = (pl.BlockSpec((nb, c_last, L), lambda n: (n, 0, 0)),
                 pl.BlockSpec((nd, nb, cd, L), lambda n: (0, n, 0, 0)))

    grid_spec = pltpu.PrefetchScalarGridSpec(
        num_scalar_prefetch=0,
        grid=(G,),
        in_specs=[pl.BlockSpec((1, Cin, nbl), lambda n: (n, 0, 0))] + w_specs,
        out_specs=out_specs,
    )

    final_d, d = pl.pallas_call(
        kernel,
        out_shape=out_shape,
        grid_spec=grid_spec,
        compiler_params=pltpu.CompilerParams(
            dimension_semantics=("parallel",),
            vmem_limit_bytes=_estimate_vmem_bytes(level_info, Cin, L, nb, nl, flat_w)),
    )(x3, *flat_w)
    return final_d, d


def init_params(key, num_inputs, num_channels, kernel_size):
    """Synthetic init matching the module: conv weights ~ N(0, 0.01), weight_norm
    folded (g initialized to ||v|| so effective weight == v at init).

    Produces PyTorch-layout effective weights:
      w1/w2: (Cout, Cin, K) f32, wd: (Cout, Cin, 1) f32, biases: (Cout,) f32.
    """
    params_list = []
    in_ch = num_inputs
    K = kernel_size
    for out_ch in num_channels:
        key, k1, k2, k3, k4, k5, k6 = jax.random.split(key, 7)

        v1 = 0.01 * jax.random.normal(k1, (out_ch, in_ch, K), jnp.float32)
        n1 = jnp.sqrt(jnp.sum(v1 * v1, axis=(1, 2), keepdims=True))
        w1 = n1 * v1 / jnp.maximum(n1, 1e-12)          # == v1 at init

        v2 = 0.01 * jax.random.normal(k2, (out_ch, out_ch, K), jnp.float32)
        n2 = jnp.sqrt(jnp.sum(v2 * v2, axis=(1, 2), keepdims=True))
        w2 = n2 * v2 / jnp.maximum(n2, 1e-12)

        p = {
            "w1": w1,
            "b1": 0.01 * jax.random.normal(k3, (out_ch,), jnp.float32),
            "w2": w2,
            "b2": 0.01 * jax.random.normal(k4, (out_ch,), jnp.float32),
        }
        if in_ch != out_ch:  # 1x1 downsample conv on the residual path
            p["wd"] = 0.01 * jax.random.normal(k5, (out_ch, in_ch, 1), jnp.float32)
            p["bd"] = 0.01 * jax.random.normal(k6, (out_ch,), jnp.float32)
        params_list.append(p)
        in_ch = out_ch
    return params_list


if __name__ == "__main__":
    key = jax.random.PRNGKey(0)
    N, C_in, L = 2, 4, 16
    num_channels = [16, 16, 16]   # 3 levels; equal widths (required for the `d` stack)
    kernel_size = 2

    key, kp, kx = jax.random.split(key, 3)
    params = init_params(kp, C_in, num_channels, kernel_size)
    x = jax.random.normal(kx, (N, C_in, L), jnp.float32)   # PyTorch NCL input layout

    final_d, d = temporal_conv_net_forward(x, params, kernel_size)
    jax.block_until_ready((final_d, d))

    assert final_d.shape == (N, num_channels[-1], L)
    assert d.shape == (len(num_channels) - 1, N, num_channels[0], L)
    print("KERNEL_OK")
</pallas_src>

<mosaic_0001>
module attributes {stable_mosaic.version = 11 : i64} {
  func.func @kernel(%arg0: i32, %arg1: memref<1x4x16xf32, #tpu.memory_space<vmem>>, %arg2: memref<16x8xbf16, #tpu.memory_space<vmem>>, %arg3: memref<16x1xf32, #tpu.memory_space<vmem>>, %arg4: memref<16x32xbf16, #tpu.memory_space<vmem>>, %arg5: memref<16x1xf32, #tpu.memory_space<vmem>>, %arg6: memref<16x4xbf16, #tpu.memory_space<vmem>>, %arg7: memref<16x1xf32, #tpu.memory_space<vmem>>, %arg8: memref<16x32xbf16, #tpu.memory_space<vmem>>, %arg9: memref<16x1xf32, #tpu.memory_space<vmem>>, %arg10: memref<16x32xbf16, #tpu.memory_space<vmem>>, %arg11: memref<16x1xf32, #tpu.memory_space<vmem>>, %arg12: memref<16x32xbf16, #tpu.memory_space<vmem>>, %arg13: memref<16x1xf32, #tpu.memory_space<vmem>>, %arg14: memref<16x32xbf16, #tpu.memory_space<vmem>>, %arg15: memref<16x1xf32, #tpu.memory_space<vmem>>, %arg16: memref<1x16x16xf32, #tpu.memory_space<vmem>>, %arg17: memref<2x1x16x16xf32, #tpu.memory_space<vmem>>) attributes {dimension_semantics = [#tpu.dimension_semantics<parallel>], iteration_bounds = array<i64: 2>, scalar_prefetch = 0 : i64, scratch_operands = 0 : i64, tpu.core_type = #tpu.core_type<tc>, window_params = [{transform_indices = @transform_0, window_bounds = array<i64: 1, 4, 16>}, {pipeline_mode = #tpu.pipeline_mode<synchronous>, transform_indices = @transform_1, window_bounds = array<i64: 16, 8>}, {pipeline_mode = #tpu.pipeline_mode<synchronous>, transform_indices = @transform_2, window_bounds = array<i64: 16, 1>}, {pipeline_mode = #tpu.pipeline_mode<synchronous>, transform_indices = @transform_3, window_bounds = array<i64: 16, 32>}, {pipeline_mode = #tpu.pipeline_mode<synchronous>, transform_indices = @transform_4, window_bounds = array<i64: 16, 1>}, {pipeline_mode = #tpu.pipeline_mode<synchronous>, transform_indices = @transform_5, window_bounds = array<i64: 16, 4>}, {pipeline_mode = #tpu.pipeline_mode<synchronous>, transform_indices = @transform_6, window_bounds = array<i64: 16, 1>}, {pipeline_mode = #tpu.pipeline_mode<synchronous>, transform_indices = @transform_7, window_bounds = array<i64: 16, 32>}, {pipeline_mode = #tpu.pipeline_mode<synchronous>, transform_indices = @transform_8, window_bounds = array<i64: 16, 1>}, {pipeline_mode = #tpu.pipeline_mode<synchronous>, transform_indices = @transform_9, window_bounds = array<i64: 16, 32>}, {pipeline_mode = #tpu.pipeline_mode<synchronous>, transform_indices = @transform_10, window_bounds = array<i64: 16, 1>}, {pipeline_mode = #tpu.pipeline_mode<synchronous>, transform_indices = @transform_11, window_bounds = array<i64: 16, 32>}, {pipeline_mode = #tpu.pipeline_mode<synchronous>, transform_indices = @transform_12, window_bounds = array<i64: 16, 1>}, {pipeline_mode = #tpu.pipeline_mode<synchronous>, transform_indices = @transform_13, window_bounds = array<i64: 16, 32>}, {pipeline_mode = #tpu.pipeline_mode<synchronous>, transform_indices = @transform_14, window_bounds = array<i64: 16, 1>}, {transform_indices = @transform_15, window_bounds = array<i64: 1, 16, 16>}, {transform_indices = @transform_16, window_bounds = array<i64: 2, 1, 16, 16>}]} {
    %0 = tpu.iota {dimensions = array<i32: 1>} : vector<1x16xi32>
    %c16_i32 = arith.constant 16 : i32
    %c0_i32 = arith.constant 0 : i32
    %1 = arith.cmpi eq, %c16_i32, %c0_i32 : i32
    %c1_i32 = arith.constant 1 : i32
    %2 = arith.select %1, %c1_i32, %c16_i32 : i32
    %3 = vector.broadcast %2 : i32 to vector<1x16xi32>
    %4 = arith.remsi %0, %3 : vector<1x16xi32>
    %c0_i32_0 = arith.constant 0 : i32
    %5 = vector.broadcast %c0_i32_0 : i32 to vector<1x16xi32>
    %6 = arith.cmpi ne, %4, %5 : vector<1x16xi32>
    %c0_i32_1 = arith.constant 0 : i32
    %7 = vector.broadcast %c0_i32_1 : i32 to vector<1x16xi32>
    %8 = arith.cmpi slt, %4, %7 : vector<1x16xi32>
    %c0_i32_2 = arith.constant 0 : i32
    %9 = arith.cmpi slt, %2, %c0_i32_2 : i32
    %10 = vector.broadcast %9 : i1 to vector<1x16xi1>
    %11 = vector.broadcast %10 : vector<1x16xi1> to vector<1x16xi1>
    %12 = arith.xori %8, %11 : vector<1x16xi1>
    %13 = arith.andi %12, %6 : vector<1x16xi1>
    %14 = vector.broadcast %2 : i32 to vector<1x16xi32>
    %15 = arith.addi %4, %14 : vector<1x16xi32>
    %16 = arith.select %13, %15, %4 : vector<1x16xi1>, vector<1x16xi32>
    %c0 = arith.constant 0 : index
    %c0_3 = arith.constant 0 : index
    %c0_4 = arith.constant 0 : index
    %17 = vector.load %arg1[%c0, %c0_3, %c0_4] : memref<1x4x16xf32, #tpu.memory_space<vmem>>, vector<1x4x16xf32>
    %18 = vector.shape_cast %17 : vector<1x4x16xf32> to vector<4x16xf32>
    %c0_5 = arith.constant 0 : index
    %c0_6 = arith.constant 0 : index
    %19 = vector.load %arg2[%c0_5, %c0_6] : memref<16x8xbf16, #tpu.memory_space<vmem>>, vector<16x8xbf16>
    %c0_7 = arith.constant 0 : index
    %c0_8 = arith.constant 0 : index
    %20 = vector.load %arg3[%c0_7, %c0_8] : memref<16x1xf32, #tpu.memory_space<vmem>>, vector<16x1xf32>
    %c0_9 = arith.constant 0 : index
    %c0_10 = arith.constant 0 : index
    %21 = vector.load %arg4[%c0_9, %c0_10] : memref<16x32xbf16, #tpu.memory_space<vmem>>, vector<16x32xbf16>
    %c0_11 = arith.constant 0 : index
    %c0_12 = arith.constant 0 : index
    %22 = vector.load %arg5[%c0_11, %c0_12] : memref<16x1xf32, #tpu.memory_space<vmem>>, vector<16x1xf32>
    %23 = arith.truncf %18 : vector<4x16xf32> to vector<4x16xbf16>
    %cst = arith.constant 0.000000e+00 : bf16
    %24 = vector.broadcast %cst : bf16 to vector<4x1xbf16>
    %25 = vector.extract_strided_slice %23 {offsets = [0, 0], sizes = [4, 15], strides = [1, 1]} : vector<4x16xbf16> to vector<4x15xbf16>
    %26 = tpu.concatenate %24, %25 in 1 : vector<4x1xbf16>, vector<4x15xbf16> -> vector<4x16xbf16>
    %c1_i32_13 = arith.constant 1 : i32
    %27 = vector.broadcast %c1_i32_13 : i32 to vector<1x16xi32>
    %28 = arith.cmpi sge, %16, %27 : vector<1x16xi32>
    %c0_i32_14 = arith.constant 0 : i32
    %29 = arith.sitofp %c0_i32_14 : i32 to bf16
    %30 = vector.shape_cast %28 : vector<1x16xi1> to vector<1x16xi1>
    %31 = vector.broadcast %30 : vector<1x16xi1> to vector<4x16xi1>
    %32 = vector.broadcast %29 : bf16 to vector<4x16xbf16>
    %33 = arith.select %31, %26, %32 : vector<4x16xi1>, vector<4x16xbf16>
    %34 = tpu.concatenate %33, %23 in 0 : vector<4x16xbf16>, vector<4x16xbf16> -> vector<8x16xbf16>
    %cst_15 = arith.constant dense<0.000000e+00> : vector<16x16xf32>
    %35 = tpu.matmul %19, %34, %cst_15 {dimension_numbers = #tpu.dot_dimension_numbers<[1], [0], [0], [1], [0, 0, 1, 1], [], []>} : vector<16x8xbf16>, vector<8x16xbf16>, vector<16x16xf32> -> vector<16x16xf32>
    %36 = vector.broadcast %20 : vector<16x1xf32> to vector<16x16xf32>
    %37 = arith.addf %35, %36 : vector<16x16xf32>
    %cst_16 = arith.constant 0.000000e+00 : f32
    %38 = vector.broadcast %cst_16 : f32 to vector<16x16xf32>
    %39 = arith.maximumf %37, %38 : vector<16x16xf32>
    %40 = arith.truncf %39 : vector<16x16xf32> to vector<16x16xbf16>
    %cst_17 = arith.constant 0.000000e+00 : bf16
    %41 = vector.broadcast %cst_17 : bf16 to vector<16x1xbf16>
    %42 = vector.extract_strided_slice %40 {offsets = [0, 0], sizes = [16, 15], strides = [1, 1]} : vector<16x16xbf16> to vector<16x15xbf16>
    %43 = tpu.concatenate %41, %42 in 1 : vector<16x1xbf16>, vector<16x15xbf16> -> vector<16x16xbf16>
    %c1_i32_18 = arith.constant 1 : i32
    %44 = vector.broadcast %c1_i32_18 : i32 to vector<1x16xi32>
    %45 = arith.cmpi sge, %16, %44 : vector<1x16xi32>
    %c0_i32_19 = arith.constant 0 : i32
    %46 = arith.sitofp %c0_i32_19 : i32 to bf16
    %47 = vector.shape_cast %45 : vector<1x16xi1> to vector<1x16xi1>
    %48 = vector.broadcast %47 : vector<1x16xi1> to vector<16x16xi1>
    %49 = vector.broadcast %46 : bf16 to vector<16x16xbf16>
    %50 = arith.select %48, %43, %49 : vector<16x16xi1>, vector<16x16xbf16>
    %51 = tpu.concatenate %50, %40 in 0 : vector<16x16xbf16>, vector<16x16xbf16> -> vector<32x16xbf16>
    %cst_20 = arith.constant dense<0.000000e+00> : vector<16x16xf32>
    %52 = tpu.matmul %21, %51, %cst_20 {dimension_numbers = #tpu.dot_dimension_numbers<[1], [0], [0], [1], [0, 0, 1, 1], [], []>} : vector<16x32xbf16>, vector<32x16xbf16>, vector<16x16xf32> -> vector<16x16xf32>
    %53 = vector.broadcast %22 : vector<16x1xf32> to vector<16x16xf32>
    %54 = arith.addf %52, %53 : vector<16x16xf32>
    %cst_21 = arith.constant 0.000000e+00 : f32
    %55 = vector.broadcast %cst_21 : f32 to vector<16x16xf32>
    %56 = arith.maximumf %54, %55 : vector<16x16xf32>
    %c0_22 = arith.constant 0 : index
    %c0_23 = arith.constant 0 : index
    %57 = vector.load %arg6[%c0_22, %c0_23] : memref<16x4xbf16, #tpu.memory_space<vmem>>, vector<16x4xbf16>
    %c0_24 = arith.constant 0 : index
    %c0_25 = arith.constant 0 : index
    %58 = vector.load %arg7[%c0_24, %c0_25] : memref<16x1xf32, #tpu.memory_space<vmem>>, vector<16x1xf32>
    %cst_26 = arith.constant dense<0.000000e+00> : vector<16x16xf32>
    %59 = tpu.matmul %57, %23, %cst_26 {dimension_numbers = #tpu.dot_dimension_numbers<[1], [0], [0], [1], [0, 0, 1, 1], [], []>} : vector<16x4xbf16>, vector<4x16xbf16>, vector<16x16xf32> -> vector<16x16xf32>
    %60 = vector.broadcast %58 : vector<16x1xf32> to vector<16x16xf32>
    %61 = arith.addf %59, %60 : vector<16x16xf32>
    %62 = arith.addf %56, %61 : vector<16x16xf32>
    %cst_27 = arith.constant 0.000000e+00 : f32
    %63 = vector.broadcast %cst_27 : f32 to vector<16x16xf32>
    %64 = arith.maximumf %62, %63 : vector<16x16xf32>
    %c0_28 = arith.constant 0 : index
    %c0_29 = arith.constant 0 : index
    %c0_30 = arith.constant 0 : index
    %c0_31 = arith.constant 0 : index
    %65 = vector.load %arg17[%c0_28, %c0_29, %c0_30, %c0_31] : memref<2x1x16x16xf32, #tpu.memory_space<vmem>>, vector<1x1x16x16xf32>
    %66 = vector.shape_cast %65 : vector<1x1x16x16xf32> to vector<16x16xf32>
    %67 = vector.shape_cast %64 : vector<16x16xf32> to vector<1x1x16x16xf32>
    tpu.vector_store %arg17[%c0_28, %c0_29, %c0_30, %c0_31], %67 {strides = array<i32>} : memref<2x1x16x16xf32, #tpu.memory_space<vmem>>, vector<1x1x16x16xf32>,
    %c0_32 = arith.constant 0 : index
    %c0_33 = arith.constant 0 : index
    %68 = vector.load %arg8[%c0_32, %c0_33] : memref<16x32xbf16, #tpu.memory_space<vmem>>, vector<16x32xbf16>
    %c0_34 = arith.constant 0 : index
    %c0_35 = arith.constant 0 : index
    %69 = vector.load %arg9[%c0_34, %c0_35] : memref<16x1xf32, #tpu.memory_space<vmem>>, vector<16x1xf32>
    %c0_36 = arith.constant 0 : index
    %c0_37 = arith.constant 0 : index
    %70 = vector.load %arg10[%c0_36, %c0_37] : memref<16x32xbf16, #tpu.memory_space<vmem>>, vector<16x32xbf16>
    %c0_38 = arith.constant 0 : index
    %c0_39 = arith.constant 0 : index
    %71 = vector.load %arg11[%c0_38, %c0_39] : memref<16x1xf32, #tpu.memory_space<vmem>>, vector<16x1xf32>
    %72 = arith.truncf %64 : vector<16x16xf32> to vector<16x16xbf16>
    %cst_40 = arith.constant 0.000000e+00 : bf16
    %73 = vector.broadcast %cst_40 : bf16 to vector<16x2xbf16>
    %74 = vector.extract_strided_slice %72 {offsets = [0, 0], sizes = [16, 14], strides = [1, 1]} : vector<16x16xbf16> to vector<16x14xbf16>
    %75 = tpu.concatenate %73, %74 in 1 : vector<16x2xbf16>, vector<16x14xbf16> -> vector<16x16xbf16>
    %c2_i32 = arith.constant 2 : i32
    %76 = vector.broadcast %c2_i32 : i32 to vector<1x16xi32>
    %77 = arith.cmpi sge, %16, %76 : vector<1x16xi32>
    %c0_i32_41 = arith.constant 0 : i32
    %78 = arith.sitofp %c0_i32_41 : i32 to bf16
    %79 = vector.shape_cast %77 : vector<1x16xi1> to vector<1x16xi1>
    %80 = vector.broadcast %79 : vector<1x16xi1> to vector<16x16xi1>
    %81 = vector.broadcast %78 : bf16 to vector<16x16xbf16>
    %82 = arith.select %80, %75, %81 : vector<16x16xi1>, vector<16x16xbf16>
    %83 = tpu.concatenate %82, %72 in 0 : vector<16x16xbf16>, vector<16x16xbf16> -> vector<32x16xbf16>
    %cst_42 = arith.constant dense<0.000000e+00> : vector<16x16xf32>
    %84 = tpu.matmul %68, %83, %cst_42 {dimension_numbers = #tpu.dot_dimension_numbers<[1], [0], [0], [1], [0, 0, 1, 1], [], []>} : vector<16x32xbf16>, vector<32x16xbf16>, vector<16x16xf32> -> vector<16x16xf32>
    %85 = vector.broadcast %69 : vector<16x1xf32> to vector<16x16xf32>
    %86 = arith.addf %84, %85 : vector<16x16xf32>
    %cst_43 = arith.constant 0.000000e+00 : f32
    %87 = vector.broadcast %cst_43 : f32 to vector<16x16xf32>
    %88 = arith.maximumf %86, %87 : vector<16x16xf32>
    %89 = arith.truncf %88 : vector<16x16xf32> to vector<16x16xbf16>
    %cst_44 = arith.constant 0.000000e+00 : bf16
    %90 = vector.broadcast %cst_44 : bf16 to vector<16x2xbf16>
    %91 = vector.extract_strided_slice %89 {offsets = [0, 0], sizes = [16, 14], strides = [1, 1]} : vector<16x16xbf16> to vector<16x14xbf16>
    %92 = tpu.concatenate %90, %91 in 1 : vector<16x2xbf16>, vector<16x14xbf16> -> vector<16x16xbf16>
    %c2_i32_45 = arith.constant 2 : i32
    %93 = vector.broadcast %c2_i32_45 : i32 to vector<1x16xi32>
    %94 = arith.cmpi sge, %16, %93 : vector<1x16xi32>
    %c0_i32_46 = arith.constant 0 : i32
    %95 = arith.sitofp %c0_i32_46 : i32 to bf16
    %96 = vector.shape_cast %94 : vector<1x16xi1> to vector<1x16xi1>
    %97 = vector.broadcast %96 : vector<1x16xi1> to vector<16x16xi1>
    %98 = vector.broadcast %95 : bf16 to vector<16x16xbf16>
    %99 = arith.select %97, %92, %98 : vector<16x16xi1>, vector<16x16xbf16>
    %100 = tpu.concatenate %99, %89 in 0 : vector<16x16xbf16>, vector<16x16xbf16> -> vector<32x16xbf16>
    %cst_47 = arith.constant dense<0.000000e+00> : vector<16x16xf32>
    %101 = tpu.matmul %70, %100, %cst_47 {dimension_numbers = #tpu.dot_dimension_numbers<[1], [0], [0], [1], [0, 0, 1, 1], [], []>} : vector<16x32xbf16>, vector<32x16xbf16>, vector<16x16xf32> -> vector<16x16xf32>
    %102 = vector.broadcast %71 : vector<16x1xf32> to vector<16x16xf32>
    %103 = arith.addf %101, %102 : vector<16x16xf32>
    %cst_48 = arith.constant 0.000000e+00 : f32
    %104 = vector.broadcast %cst_48 : f32 to vector<16x16xf32>
    %105 = arith.maximumf %103, %104 : vector<16x16xf32>
    %106 = arith.addf %105, %64 : vector<16x16xf32>
    %cst_49 = arith.constant 0.000000e+00 : f32
    %107 = vector.broadcast %cst_49 : f32 to vector<16x16xf32>
    %108 = arith.maximumf %106, %107 : vector<16x16xf32>
    %c1 = arith.constant 1 : index
    %c0_50 = arith.constant 0 : index
    %c0_51 = arith.constant 0 : index
    %c0_52 = arith.constant 0 : index
    %109 = vector.load %arg17[%c1, %c0_50, %c0_51, %c0_52] : memref<2x1x16x16xf32, #tpu.memory_space<vmem>>, vector<1x1x16x16xf32>
    %110 = vector.shape_cast %109 : vector<1x1x16x16xf32> to vector<16x16xf32>
    %111 = vector.shape_cast %108 : vector<16x16xf32> to vector<1x1x16x16xf32>
    tpu.vector_store %arg17[%c1, %c0_50, %c0_51, %c0_52], %111 {strides = array<i32>} : memref<2x1x16x16xf32, #tpu.memory_space<vmem>>, vector<1x1x16x16xf32>,
    %c0_53 = arith.constant 0 : index
    %c0_54 = arith.constant 0 : index
    %112 = vector.load %arg12[%c0_53, %c0_54] : memref<16x32xbf16, #tpu.memory_space<vmem>>, vector<16x32xbf16>
    %c0_55 = arith.constant 0 : index
    %c0_56 = arith.constant 0 : index
    %113 = vector.load %arg13[%c0_55, %c0_56] : memref<16x1xf32, #tpu.memory_space<vmem>>, vector<16x1xf32>
    %c0_57 = arith.constant 0 : index
    %c0_58 = arith.constant 0 : index
    %114 = vector.load %arg14[%c0_57, %c0_58] : memref<16x32xbf16, #tpu.memory_space<vmem>>, vector<16x32xbf16>
    %c0_59 = arith.constant 0 : index
    %c0_60 = arith.constant 0 : index
    %115 = vector.load %arg15[%c0_59, %c0_60] : memref<16x1xf32, #tpu.memory_space<vmem>>, vector<16x1xf32>
    %116 = arith.truncf %108 : vector<16x16xf32> to vector<16x16xbf16>
    %cst_61 = arith.constant 0.000000e+00 : bf16
    %117 = vector.broadcast %cst_61 : bf16 to vector<16x4xbf16>
    %118 = vector.extract_strided_slice %116 {offsets = [0, 0], sizes = [16, 12], strides = [1, 1]} : vector<16x16xbf16> to vector<16x12xbf16>
    %119 = tpu.concatenate %117, %118 in 1 : vector<16x4xbf16>, vector<16x12xbf16> -> vector<16x16xbf16>
    %c4_i32 = arith.constant 4 : i32
    %120 = vector.broadcast %c4_i32 : i32 to vector<1x16xi32>
    %121 = arith.cmpi sge, %16, %120 : vector<1x16xi32>
    %c0_i32_62 = arith.constant 0 : i32
    %122 = arith.sitofp %c0_i32_62 : i32 to bf16
    %123 = vector.shape_cast %121 : vector<1x16xi1> to vector<1x16xi1>
    %124 = vector.broadcast %123 : vector<1x16xi1> to vector<16x16xi1>
    %125 = vector.broadcast %122 : bf16 to vector<16x16xbf16>
    %126 = arith.select %124, %119, %125 : vector<16x16xi1>, vector<16x16xbf16>
    %127 = tpu.concatenate %126, %116 in 0 : vector<16x16xbf16>, vector<16x16xbf16> -> vector<32x16xbf16>
    %cst_63 = arith.constant dense<0.000000e+00> : vector<16x16xf32>
    %128 = tpu.matmul %112, %127, %cst_63 {dimension_numbers = #tpu.dot_dimension_numbers<[1], [0], [0], [1], [0, 0, 1, 1], [], []>} : vector<16x32xbf16>, vector<32x16xbf16>, vector<16x16xf32> -> vector<16x16xf32>
    %129 = vector.broadcast %113 : vector<16x1xf32> to vector<16x16xf32>
    %130 = arith.addf %128, %129 : vector<16x16xf32>
    %cst_64 = arith.constant 0.000000e+00 : f32
    %131 = vector.broadcast %cst_64 : f32 to vector<16x16xf32>
    %132 = arith.maximumf %130, %131 : vector<16x16xf32>
    %133 = arith.truncf %132 : vector<16x16xf32> to vector<16x16xbf16>
    %cst_65 = arith.constant 0.000000e+00 : bf16
    %134 = vector.broadcast %cst_65 : bf16 to vector<16x4xbf16>
    %135 = vector.extract_strided_slice %133 {offsets = [0, 0], sizes = [16, 12], strides = [1, 1]} : vector<16x16xbf16> to vector<16x12xbf16>
    %136 = tpu.concatenate %134, %135 in 1 : vector<16x4xbf16>, vector<16x12xbf16> -> vector<16x16xbf16>
    %c4_i32_66 = arith.constant 4 : i32
    %137 = vector.broadcast %c4_i32_66 : i32 to vector<1x16xi32>
    %138 = arith.cmpi sge, %16, %137 : vector<1x16xi32>
    %c0_i32_67 = arith.constant 0 : i32
    %139 = arith.sitofp %c0_i32_67 : i32 to bf16
    %140 = vector.shape_cast %138 : vector<1x16xi1> to vector<1x16xi1>
    %141 = vector.broadcast %140 : vector<1x16xi1> to vector<16x16xi1>
    %142 = vector.broadcast %139 : bf16 to vector<16x16xbf16>
    %143 = arith.select %141, %136, %142 : vector<16x16xi1>, vector<16x16xbf16>
    %144 = tpu.concatenate %143, %133 in 0 : vector<16x16xbf16>, vector<16x16xbf16> -> vector<32x16xbf16>
    %cst_68 = arith.constant dense<0.000000e+00> : vector<16x16xf32>
    %145 = tpu.matmul %114, %144, %cst_68 {dimension_numbers = #tpu.dot_dimension_numbers<[1], [0], [0], [1], [0, 0, 1, 1], [], []>} : vector<16x32xbf16>, vector<32x16xbf16>, vector<16x16xf32> -> vector<16x16xf32>
    %146 = vector.broadcast %115 : vector<16x1xf32> to vector<16x16xf32>
    %147 = arith.addf %145, %146 : vector<16x16xf32>
    %cst_69 = arith.constant 0.000000e+00 : f32
    %148 = vector.broadcast %cst_69 : f32 to vector<16x16xf32>
    %149 = arith.maximumf %147, %148 : vector<16x16xf32>
    %150 = arith.addf %149, %108 : vector<16x16xf32>
    %cst_70 = arith.constant 0.000000e+00 : f32
    %151 = vector.broadcast %cst_70 : f32 to vector<16x16xf32>
    %152 = arith.maximumf %150, %151 : vector<16x16xf32>
    %c0_71 = arith.constant 0 : index
    %c0_72 = arith.constant 0 : index
    %c0_73 = arith.constant 0 : index
    %153 = vector.load %arg16[%c0_71, %c0_72, %c0_73] : memref<1x16x16xf32, #tpu.memory_space<vmem>>, vector<1x16x16xf32>
    %154 = vector.shape_cast %153 : vector<1x16x16xf32> to vector<16x16xf32>
    %155 = vector.shape_cast %152 : vector<16x16xf32> to vector<1x16x16xf32>
    tpu.vector_store %arg16[%c0_71, %c0_72, %c0_73], %155 {strides = array<i32>} : memref<1x16x16xf32, #tpu.memory_space<vmem>>, vector<1x16x16xf32>,
    return
  }
  func.func @transform_0(%arg0: i32) -> (i32, i32, i32) {
    %c0_i32 = arith.constant 0 : i32
    %c0_i32_0 = arith.constant 0 : i32
    %c0_i32_1 = arith.constant 0 : i32
    return %arg0, %c0_i32, %c0_i32_0 : i32, i32, i32
  }
  func.func @transform_1(%arg0: i32) -> (i32, i32) {
    %c0_i32 = arith.constant 0 : i32
    %c0_i32_0 = arith.constant 0 : i32
    %c0_i32_1 = arith.constant 0 : i32
    return %c0_i32, %c0_i32_0 : i32, i32
  }
  func.func @transform_2(%arg0: i32) -> (i32, i32) {
    %c0_i32 = arith.constant 0 : i32
    %c0_i32_0 = arith.constant 0 : i32
    %c0_i32_1 = arith.constant 0 : i32
    return %c0_i32, %c0_i32_0 : i32, i32
  }
  func.func @transform_3(%arg0: i32) -> (i32, i32) {
    %c0_i32 = arith.constant 0 : i32
    %c0_i32_0 = arith.constant 0 : i32
    %c0_i32_1 = arith.constant 0 : i32
    return %c0_i32, %c0_i32_0 : i32, i32
  }
  func.func @transform_4(%arg0: i32) -> (i32, i32) {
    %c0_i32 = arith.constant 0 : i32
    %c0_i32_0 = arith.constant 0 : i32
    %c0_i32_1 = arith.constant 0 : i32
    return %c0_i32, %c0_i32_0 : i32, i32
  }
  func.func @transform_5(%arg0: i32) -> (i32, i32) {
    %c0_i32 = arith.constant 0 : i32
    %c0_i32_0 = arith.constant 0 : i32
    %c0_i32_1 = arith.constant 0 : i32
    return %c0_i32, %c0_i32_0 : i32, i32
  }
  func.func @transform_6(%arg0: i32) -> (i32, i32) {
    %c0_i32 = arith.constant 0 : i32
    %c0_i32_0 = arith.constant 0 : i32
    %c0_i32_1 = arith.constant 0 : i32
    return %c0_i32, %c0_i32_0 : i32, i32
  }
  func.func @transform_7(%arg0: i32) -> (i32, i32) {
    %c0_i32 = arith.constant 0 : i32
    %c0_i32_0 = arith.constant 0 : i32
    %c0_i32_1 = arith.constant 0 : i32
    return %c0_i32, %c0_i32_0 : i32, i32
  }
  func.func @transform_8(%arg0: i32) -> (i32, i32) {
    %c0_i32 = arith.constant 0 : i32
    %c0_i32_0 = arith.constant 0 : i32
    %c0_i32_1 = arith.constant 0 : i32
    return %c0_i32, %c0_i32_0 : i32, i32
  }
  func.func @transform_9(%arg0: i32) -> (i32, i32) {
    %c0_i32 = arith.constant 0 : i32
    %c0_i32_0 = arith.constant 0 : i32
    %c0_i32_1 = arith.constant 0 : i32
    return %c0_i32, %c0_i32_0 : i32, i32
  }
  func.func @transform_10(%arg0: i32) -> (i32, i32) {
    %c0_i32 = arith.constant 0 : i32
    %c0_i32_0 = arith.constant 0 : i32
    %c0_i32_1 = arith.constant 0 : i32
    return %c0_i32, %c0_i32_0 : i32, i32
  }
  func.func @transform_11(%arg0: i32) -> (i32, i32) {
    %c0_i32 = arith.constant 0 : i32
    %c0_i32_0 = arith.constant 0 : i32
    %c0_i32_1 = arith.constant 0 : i32
    return %c0_i32, %c0_i32_0 : i32, i32
  }
  func.func @transform_12(%arg0: i32) -> (i32, i32) {
    %c0_i32 = arith.constant 0 : i32
    %c0_i32_0 = arith.constant 0 : i32
    %c0_i32_1 = arith.constant 0 : i32
    return %c0_i32, %c0_i32_0 : i32, i32
  }
  func.func @transform_13(%arg0: i32) -> (i32, i32) {
    %c0_i32 = arith.constant 0 : i32
    %c0_i32_0 = arith.constant 0 : i32
    %c0_i32_1 = arith.constant 0 : i32
    return %c0_i32, %c0_i32_0 : i32, i32
  }
  func.func @transform_14(%arg0: i32) -> (i32, i32) {
    %c0_i32 = arith.constant 0 : i32
    %c0_i32_0 = arith.constant 0 : i32
    %c0_i32_1 = arith.constant 0 : i32
    return %c0_i32, %c0_i32_0 : i32, i32
  }
  func.func @transform_15(%arg0: i32) -> (i32, i32, i32) {
    %c0_i32 = arith.constant 0 : i32
    %c0_i32_0 = arith.constant 0 : i32
    %c0_i32_1 = arith.constant 0 : i32
    return %arg0, %c0_i32, %c0_i32_0 : i32, i32, i32
  }
  func.func @transform_16(%arg0: i32) -> (i32, i32, i32, i32) {
    %c0_i32 = arith.constant 0 : i32
    %c0_i32_0 = arith.constant 0 : i32
    %c0_i32_1 = arith.constant 0 : i32
    %c0_i32_2 = arith.constant 0 : i32
    return %c0_i32, %arg0, %c0_i32_0, %c0_i32_1 : i32, i32, i32, i32
  }
}

</mosaic_0001>

<bundles_post_ra>
// kernel: tpu_custom_call.1
= control target key start
LH: loop header
LB: loop body
LE: loop exit
PB: predicated region body
PF: predicated region fallthrough
CT: control target
= control target key end

     0   :  { %s1915_s0 = inlined_call_operand.vmem [shape: f32[2,4,16], index: 0, kind: input, shape index: {}]   ;;  %s1916_s1 = inlined_call_operand.vmem [shape: bf16[16,8], index: 1, kind: input, shape index: {}]   ;;  %s1917_s2 = inlined_call_operand.vmem [shape: f32[16,1], index: 2, kind: input, shape index: {}]   ;;  %s1918_s3 = inlined_call_operand.vmem [shape: bf16[16,32], index: 3, kind: input, shape index: {}]   ;;  %s1919_s4 = inlined_call_operand.vmem [shape: f32[16,1], index: 4, kind: input, shape index: {}]   ;;  %s1920_s5 = inlined_call_operand.vmem [shape: bf16[16,4], index: 5, kind: input, shape index: {}]   ;;  %s1921_s6 = inlined_call_operand.vmem [shape: f32[16,1], index: 6, kind: input, shape index: {}]   ;;  %s1922_s7 = inlined_call_operand.vmem [shape: bf16[16,32], index: 7, kind: input, shape index: {}]   ;;  %s1923_s8 = inlined_call_operand.vmem [shape: f32[16,1], index: 8, kind: input, shape index: {}]   ;;  %s1924_s9 = inlined_call_operand.vmem [shape: bf16[16,32], index: 9, kind: input, shape index: {}]   ;;  %s1925_s10 = inlined_call_operand.vmem [shape: f32[16,1], index: 10, kind: input, shape index: {}]   ;;  %s1926_s11 = inlined_call_operand.vmem [shape: bf16[16,32], index: 11, kind: input, shape index: {}]   ;;  %s1927_s12 = inlined_call_operand.vmem [shape: f32[16,1], index: 12, kind: input, shape index: {}]   ;;  %s1928_s13 = inlined_call_operand.vmem [shape: bf16[16,32], index: 13, kind: input, shape index: {}]   ;;  %s1929_s14 = inlined_call_operand.vmem [shape: f32[16,1], index: 14, kind: input, shape index: {}]   ;;  %s1930_s15 = inlined_call_operand.hbm [shape: f32[2,16,16], index: 15, kind: output, shape index: {0}]   ;;  %s1931_s16 = inlined_call_operand.hbm [shape: f32[2,2,16,16], index: 16, kind: output, shape index: {1}]  }
   0x1   :  { %1937 = sst [smem:[#allocation14_spill]] %s1915_s0 }
   0x2   :  { %1938 = sst [smem:[#allocation15_spill]] %s1916_s1 }
   0x3   :  { %1939 = sst [smem:[#allocation16_spill]] %s1917_s2 }
   0x4   :  { %1940 = sst [smem:[#allocation17_spill]] %s1918_s3 }
   0x5   :  { %1941 = sst [smem:[#allocation18_spill]] %s1919_s4 }
   0x6   :  { %22 = vsyncpa [#allocation3], 0 }
   0x7   :  { %24 = vsyncpa [#allocation3 + $0x1], 0 }
   0x8   :  { %25 = vsyncpa [#allocation5], 0 }
   0x9   :  { %27 = vsyncpa [#allocation5 + $0x1], 0  ;;  %s1619_s21 = smov 0   ;;  %s1621_s22 = smov 0  }
   0xa   :  { %s1623_s23 = smov 0   ;;  %s1625_s24 = smov 0  }
   0xb LB: > { %1942 = sst [smem:[#allocation10_spill]] %s1512_s23  ;;  %s1640_s25 = sadd.s32 4294967295, %s1516_s24   ;;  %s1516_s24 = sphi %s1625_s24, %s1962_s24   ;;  %s1512_s23 = sphi %s1623_s23, %s1967_s23   ;;  %s1508_s22 = sphi %s1621_s22, %s1966_s22   ;;  %s1504_s21 = sphi %s1619_s21, %s1965_s21  }
   0xc   : > { %s1272_s26 = sadd.s32 4294967294, %s1516_s24   ;;  %s1644_s27 = sadd.s32 1, %s1516_s24  }
   0xd   : > { %1943 = sst [smem:[#allocation11_spill]] %s1644_s27  ;;  %s360_s28 = sadd.s32 1, %s1512_s23 }
   0xe   : > { %s357_s29 = ssub.s32 %s1516_s24, %s1644_s27  ;;  %p370_p0 = scmp.ne.s32.totalorder %s1512_s23, %s1508_s22 }
   0xf   : > { %p358_p1 = scmp.eq.s32.totalorder %s357_s29, 0  ;;  %p371_p2 = scmp.eq.s32.totalorder %s1640_s25, 1 }
  0x10   : > { %p376_p3 = scmp.ne.s32.totalorder %s1508_s22, %s1504_s21  ;;  %p377_p4 = scmp.eq.s32.totalorder %s1272_s26, 1 }
  0x11   : > { %s1655_s30 = scalar_select %p358_p1, %s1512_s23, %s360_s28  }
  0x12   : > { %p1657_p5 = por %p371_p2, %p370_p0  ;;  %p1661_p6 = por %p377_p4, %p376_p3 }
  0x13   : > { %1944 = sst [smem:[#allocation12_spill]] %s1655_s30  ;;  %p1275_p7 = scmp.ge.s32.totalorder %s1516_s24, 1 }
  0x14   : > { %s1946_s17 = scalar_select %p1661_p6, 1, 0 }
  0x15   : > { %p470_p8 = scmp.lt.s32.totalorder %s1516_s24, 3 }
  0x16   : > { %1947 = sst [smem:[#allocation13_spill]] %s1946_s17 }
  0x17   : > { %p471_p9 = pnand %p1275_p7, %p470_p8 }
  0x18   : > { %p524_p10 = scmp.lt.s32.totalorder (!%p471_p9), %s1640_s25, 1  ;;  %v1518_v0 = vmov (!%p471_p9), 0.0   ;;  %vm1519_vm0 = vmmov (!%p471_p9), 0   ;;  %s1948_s28 = sld [smem:[#allocation14_spill]] (!%p471_p9)  ;;  %v1521_v4 = vmov (!%p471_p9), 0   ;;  %v717_v7 = vld [vmem:[%s1921_s6 + $0x8] sm:$0xff] (!%p471_p9)  ;;  %v531_v9 = vlaneseq (!%p471_p9) }
  0x19   : > { %474 = sbr.rel (%p471_p9) target bundleno = 2136 (0x858), region = 80  ;;  %1324 = vmatprep.subr.bf16.mxu0 (!%p471_p9), %v1518_v0  ;;  %1330 = vmatprep.subr.bf16.mxu1 (!%p471_p9), %v1518_v0  ;;  %s1520_s30 = smov (!%p471_p9), 1   ;;  %v790_v8 = vld [vmem:[%s1923_s8] sm:$0xff] (!%p471_p9)  ;;  %vm558_vm2 = vcmask (!%p471_p9), 7168   ;;  %vm569_vm4 = vcmask (!%p471_p9), 1041408   ;;  %vm592_vm5 = vcmask (!%p471_p9), 1043456  }
  0x1a   : > { %1326 = vmatprep.mubr.msk.bf16.mxu0 (!%p471_p9), %vm1519_vm0, %v1518_v0  ;;  %1334 = vmatprep.mubr.msk.bf16.mxu1 (!%p471_p9), %vm1519_vm0, %v1518_v0  ;;  %s1949_s2 = sld [smem:[#allocation16_spill]] (!%p471_p9)  ;;  %s1950_s4 = sld [smem:[#allocation18_spill]] (!%p471_p9)  ;;  %v532_v10 = vand.u32 (!%p471_p9), 127, %v531_v9  ;;  %vm588_vm6 = vcmask (!%p471_p9), 64512   ;;  %v1444_v21 = vld [vmem:[%s1920_s5] sm:$0xff] (!%p471_p9)   ;;  %vm733_vm7 = vcmask (!%p471_p9), 31744  }
  0x1b   : > { %1441 = vset.pattern.permute.xlu0 (!%p471_p9), %v1521_v4  ;;  %1442 = vset.pattern.permute.xlu1 (!%p471_p9), %v1521_v4  ;;  %s1953_s1 = sld [smem:[#allocation15_spill]] (!%p471_p9)  ;;  %v716_v38 = vld [vmem:[%s1921_s6] sm:$0xff] (!%p471_p9)  ;;  %v647_v39 = vshrl.u32 (!%p471_p9), %v531_v9, 7  ;;  %s1954_s3 = sld [smem:[#allocation17_spill]] (!%p471_p9)  ;;  %vm667_vm9 = vcmask (!%p471_p9), 261120   ;;  %vm785_vm10 = vcmask (!%p471_p9), 130048  }
  0x1c   : > { %v1696_v11 = vand.u32 (!%p471_p9), 15, %v532_v10  ;;  %s1742_s17 = sand.u32 (!%p471_p9), 1, %s1508_s22   ;;  %vm800_vm13 = vcmask (!%p471_p9), 15360   ;;  %s1936_s26 = sshll.u32 (!%p471_p9), %s1640_s25, 8 }
  0x1d   : > { %v1726_v40 = vsub.s32 (!%p471_p9), 0, %v647_v39 }
  0x1e   : > { %vm563_vm1 = vcmp.ge.s32.totalorder (!%p471_p9), %v1696_v11, 1  ;;  %vm804_vm11 = vcmp.ge.s32.totalorder (!%p471_p9), %v1696_v11, 2  ;;  %vm967_vm15 = vcmp.ge.s32.totalorder (!%p471_p9), %v1696_v11, 4  ;;  %v1448_v11 = vld [vmem:[%s1926_s11] sm:$0xff] (!%p471_p9)  }
  0x1f   : > { %vm1699_vm3 = vmpackc.low (!%p471_p9), %vm563_vm1, %vm563_vm1 }
  0x20   : > { %s525_s18 = scalar_select %p524_p10, %s1640_s25, 1  ;;  %v548_v3 = vld [vmem:[%s1949_s2] sm:$0xff]  ;;  %v549_v5 = vld [vmem:[%s1949_s2 + $0x8] sm:$0xff]  ;;  %v645_v41 = vsel %vm1699_vm3, 65537, %v1521_v4  ;;  %vm807_vm12 = vmpackc.low %vm804_vm11, %vm804_vm11 }
  0x21   : > { %580 = vperm.xlu1 %1442, %v549_v5   ;;  %v553_v6 = vld [vmem:[%s1950_s4 + $0x8] sm:$0xff]  ;;  %v1443_v19 = vld [vmem:[%s1953_s1] sm:$0xff]   ;;  %v649_v42 = vrot.slane %v645_v41, %v1726_v40  ;;  %s1524_s1 = smov [#allocation2]  }
  0x22   : > { %s1278_s19 = sshll.u32 %s525_s18, 2  ;;  %v552_v36 = vld [vmem:[%s1950_s4] sm:$0xff]  ;;  %s1454_s23 = sshll.u32 %s1524_s1, 4  ;;  %s1455_s23 = int_to_ptr.vmem [resolvable:$false] %s1454_s23 }
  0x23   : > { %s527_s29 = scalar_lea.vmem %s1948_s28, %s1278_s19  ;;  %vm650_vm8 = vcmp.ne.s16.totalorder %v649_v42, 0  ;;  %v1445_v46 = vld [vmem:[%s1954_s3] sm:$0xff]   ;;  %s1522_s19 = smov 2  }
  0x24   : > { %v545_v1 = vld [vmem:[%s527_s29] sm:$0xf]  ;;  %s1277_s29 = sshll.u32 %s1742_s17, 5  ;;  %s1456_s27 = scalar_lea.vmem %s1455_s23, 512 }
  0x25   : > { %v554_v2 = vpack.c.bf16 %v545_v1, %v545_v1  ;;  %s1747_s18 = scalar_lea.vmem [#allocation4], %s1277_s29  ;;  %v794_v5 = vld [vmem:[%s1925_s10] sm:$0xff]  ;;  %s1847_s29 = scalar_lea.hbm %s1930_s15, %s1936_s26 }
  0x27   : > { %556 = vrot.lane.b32.xlu0 %v554_v2, %s1520_s30  ;;  %v568_v13 = vrot.slane %v554_v2, 6  ;;  %v738_v20 = vsel %vm569_vm4, %v554_v2, 0 }
  0x2b   : > { %575 = vperm.xlu0 %1441, %v548_v3   ;;  %v791_v3 = vld [vmem:[%s1923_s8 + $0x8] sm:$0xff] }
  0x2f   : > { %659 = vperm.xlu0 %1441, %v553_v6   ;;  %v808_v6 = vsel %vm807_vm12, 65537, %v1521_v4 }
  0x33   : > { %725 = vperm.xlu0 %1441, %v717_v7   ;;  %v812_v7 = vrot.slane %v808_v6, %v1726_v40  ;;  %v1449_v6 = vld [vmem:[%s1928_s13] sm:$0xff]  }
  0x35   : > { %vm1769_vm14 = vcmp.ne.s16.totalorder %v812_v7, 0 }
  0x37   : > { %817 = vperm.xlu0 %1441, %v790_v8  }
  0x99   : > { %v557_v14 = vpop.permute.xlu0 %556 }
  0x9a   : > { %v561_v15 = vsel %vm558_vm2, 0, %v557_v14 }
  0x9b   : > { %v567_v16 = vsel %vm1699_vm3, %v561_v15, 0 }
  0x9c   : > { %v572_v17 = vsel %vm569_vm4, %v567_v16, %v568_v13  ;;  %v1446_v13 = vld [vmem:[%s1922_s7] sm:$0xff]  }
  0x9d   : > { %v593_v18 = vsel %vm592_vm5, %v572_v17, 0 }
  0x9e   : > { %1325 = vmatpush3.bf16.msra.mxu0 %v593_v18 }
  0x9f   : > { %1338 = vmatprep.subr.bf16.mxu0 %v1518_v0 }
  0xa0   : > { %v581_v24 = vpop.permute.xlu1 %580 }
  0xa1   : > { %1327 = vmatmul.mubr.msk.bf16.vlgmr.msra.gmra.mrb[0].mxu0 %vm588_vm6, %v1443_v19 }
  0xa2   : > { %1339 = vmatpush3.bf16.msra.mxu0 %v738_v20  ;;  %1340 = vmatprep.mubr.msk.bf16.mxu0 %vm1519_vm0, %v1518_v0 }
  0xa3   : > { %1352 = vmatprep.subr.bf16.mxu0 %v1518_v0 }
  0xa9   : > { %1341 = vmatmul.mubr.msk.bf16.vlgmr.msra.gmra.mrb[4].mxu0 %vm733_vm7, %v1444_v21 }
  0xaa   : > { %1356 = vmatprep.mubr.msk.bf16.mxu0 %vm1519_vm0, %v1518_v0  ;;  %v576_v22 = vpop.permute.xlu0 %575 }
  0xae   : > { %v660_v48 = vpop.permute.xlu0 %659 }
  0xb2   : > { %v726_v58 = vpop.permute.xlu0 %725 }
  0xb6   : > { %v818_v14 = vpop.permute.xlu0 %817 }
 0x174   : > { %v629_v23 = vpop.f32.mrb[0].mxu0 }
 0x175   : > { %v630_v25 = vadd.f32 %v629_v23, %v576_v22  ;;  %v1328_v26 = vpop.f32.mrb[1].mxu0 }
 0x176   : > { %v632_v27 = vpop.f32.mrb[2].mxu0  ;;  %v954_v26 = vld [vmem:[%s1927_s12] sm:$0xff] }
 0x177   : > { %v633_v28 = vadd.f32 %v632_v27, %v581_v24  ;;  %v1329_v29 = vpop.f32.mrb[3].mxu0  ;;  %v636_v30 = vmax.f32 %v630_v25, 0.0  ;;  %v795_v25 = vld [vmem:[%s1925_s10 + $0x8] sm:$0xff] }
 0x179   : > { %v637_v31 = vmax.f32 %v633_v28, 0.0 }
 0x17b   : > { %v638_v32 = vpack.c.bf16 %v637_v31, %v636_v30  ;;  %v1447_v30 = vld [vmem:[%s1924_s9] sm:$0xff]  }
 0x17c   : > { %v774_v33 = vpop.f32.mrb[4].mxu0 }
 0x17d   : > { %640 = vrot.lane.b32.xlu1 %v638_v32, %s1520_s30  ;;  %v1342_v34 = vpop.f32.mrb[5].mxu0  ;;  %s1523_s30 = smov 4  }
 0x17e   : > { %v777_v35 = vpop.f32.mrb[6].mxu0 }
 0x17f   : > { %v1343_v37 = vpop.f32.mrb[7].mxu0  ;;  %v778_v59 = vadd.f32 %v777_v35, %v726_v58 }
 0x181   : > { %654 = vperm.xlu1 %1442, %v552_v36  }
 0x185   : > { %720 = vperm.xlu1 %1442, %v716_v38  }
 0x1ef   : > { %v641_v43 = vpop.permute.xlu1 %640 }
 0x1f0   : > { %v643_v44 = vsel %vm558_vm2, 0, %v641_v43 }
 0x1f1   : > { %v651_v45 = vsel %vm650_vm8, %v643_v44, 0 }
 0x1f2   : > { %1331 = vmatpush3.bf16.msra.mxu1 %v651_v45 }
 0x1f3   : > { %1332 = vmatprep.subr.bf16.mxu1 %v1518_v0 }
 0x1f6   : > { %1333 = vmatpush3.bf16.msra.mxu1 %v638_v32 }
 0x1f7   : > { %1344 = vmatprep.subr.bf16.mxu1 %v1518_v0 }
 0x1f9   : > { %1335 = vmatmul.mubr.msk.bf16.vlgmr.msra.gmra.mrb[0].mxu1 %vm667_vm9, %v1445_v46 }
 0x1fa   : > { %1348 = vmatprep.mubr.msk.bf16.mxu1 %vm1519_vm0, %v1518_v0 }
 0x200   : > { %v655_v47 = vpop.permute.xlu1 %654 }
 0x204   : > { %v721_v49 = vpop.permute.xlu1 %720 }
 0x205   : > { %v775_v54 = vadd.f32 %v774_v33, %v721_v49 }
 0x2cc   : > { %v705_v50 = vpop.f32.mrb[0].mxu1 }
 0x2cd   : > { %v706_v51 = vadd.f32 %v705_v50, %v655_v47  ;;  %v1336_v52 = vpop.f32.mrb[1].mxu1  ;;  %v955_v47 = vld [vmem:[%s1927_s12 + $0x8] sm:$0xff] }
 0x2ce   : > { %v708_v53 = vpop.f32.mrb[2].mxu1 }
 0x2cf   : > { %v712_v55 = vmax.f32 %v706_v51, 0.0  ;;  %v709_v56 = vadd.f32 %v708_v53, %v660_v48  ;;  %v1337_v57 = vpop.f32.mrb[3].mxu1  ;;  %v958_v48 = vld [vmem:[%s1929_s14] sm:$0xff] }
 0x2d1   : > { %v781_v60 = vadd.f32 %v775_v54, %v712_v55  ;;  %v713_v61 = vmax.f32 %v709_v56, 0.0 }
 0x2d3   : > { %v1745_v62 = vmax.f32 %v781_v60, 0.0  ;;  %v782_v63 = vadd.f32 %v778_v59, %v713_v61 }
 0x2d5   : > { %786 = vst.msk [vmem:[%s1747_s18] sm:$0xff] %vm785_vm10, %v1745_v62  ;;  %v1752_v1 = vmax.f32 %v782_v63, 0.0 }
 0x2d7   : > { %787 = vst.msk [vmem:[%s1747_s18 + $0x8] sm:$0xff] %vm785_vm10, %v1752_v1  ;;  %v796_v2 = vpack.c.bf16 %v1752_v1, %v1745_v62 }
 0x2d9   : > { %798 = vrot.lane.b32.xlu1 %v796_v2, %s1522_s19 }
 0x2dd   : > { %822 = vperm.xlu1 %1442, %v791_v3  }
 0x2e1   : > { %886 = vperm.xlu1 %1442, %v794_v5  }
 0x34b   : > { %v799_v9 = vpop.permute.xlu1 %798 }
 0x34c   : > { %v802_v10 = vsel %vm800_vm13, 0, %v799_v9 }
 0x34d   : > { %v814_v12 = vsel %vm1769_vm14, %v802_v10, 0 }
 0x34e   : > { %1345 = vmatpush3.bf16.msra.mxu1 %v814_v12 }
 0x34f   : > { %1346 = vmatprep.subr.bf16.mxu1 %v1518_v0 }
 0x352   : > { %1347 = vmatpush3.bf16.msra.mxu1 %v796_v2 }
 0x353   : > { %1360 = vmatprep.subr.bf16.mxu1 %v1518_v0 }
 0x355   : > { %1349 = vmatmul.mubr.msk.bf16.vlgmr.msra.gmra.mrb[4].mxu1 %vm667_vm9, %v1446_v13 }
 0x356   : > { %1364 = vmatprep.mubr.msk.bf16.mxu1 %vm1519_vm0, %v1518_v0 }
 0x35c   : > { %v823_v18 = vpop.permute.xlu1 %822 }
 0x360   : > { %v887_v31 = vpop.permute.xlu1 %886 }
 0x428   : > { %v867_v15 = vpop.f32.mrb[4].mxu1 }
 0x429   : > { %v868_v16 = vadd.f32 %v867_v15, %v818_v14  ;;  %v1350_v17 = vpop.f32.mrb[5].mxu1 }
 0x42a   : > { %v870_v19 = vpop.f32.mrb[6].mxu1 }
 0x42b   : > { %v871_v20 = vadd.f32 %v870_v19, %v823_v18  ;;  %v1351_v21 = vpop.f32.mrb[7].mxu1  ;;  %v874_v22 = vmax.f32 %v868_v16, 0.0 }
 0x42d   : > { %v875_v23 = vmax.f32 %v871_v20, 0.0 }
 0x42f   : > { %v876_v24 = vpack.c.bf16 %v875_v23, %v874_v22 }
 0x431   : > { %878 = vrot.lane.b32.xlu0 %v876_v24, %s1522_s19 }
 0x435   : > { %891 = vperm.xlu0 %1441, %v795_v25  }
 0x439   : > { %980 = vperm.xlu0 %1441, %v954_v26  }
 0x4a3   : > { %v879_v27 = vpop.permute.xlu0 %878 }
 0x4a4   : > { %v881_v28 = vsel %vm800_vm13, 0, %v879_v27 }
 0x4a5   : > { %v883_v29 = vsel %vm1769_vm14, %v881_v28, 0 }
 0x4a6   : > { %1353 = vmatpush3.bf16.msra.mxu0 %v883_v29 }
 0x4a7   : > { %1354 = vmatprep.subr.bf16.mxu0 %v1518_v0 }
 0x4aa   : > { %1355 = vmatpush3.bf16.msra.mxu0 %v876_v24 }
 0x4ab   : > { %1368 = vmatprep.subr.bf16.mxu0 %v1518_v0 }
 0x4ad   : > { %1357 = vmatmul.mubr.msk.bf16.vlgmr.msra.gmra.mrb[8].mxu0 %vm667_vm9, %v1447_v30 }
 0x4ae   : > { %1372 = vmatprep.mubr.msk.bf16.mxu0 %vm1519_vm0, %v1518_v0  ;;  %vm970_vm0 = vmpackc.low %vm967_vm15, %vm967_vm15 }
 0x4af   : > { %v971_v49 = vsel %vm970_vm0, 65537, %v1521_v4 }
 0x4b0   : > { %v975_v50 = vrot.slane %v971_v49, %v1726_v40 }
 0x4b2   : > { %vm1817_vm1 = vcmp.ne.s16.totalorder %v975_v50, 0 }
 0x4b4   : > { %v892_v35 = vpop.permute.xlu0 %891 }
 0x4b8   : > { %v981_v4 = vpop.permute.xlu0 %980 }
 0x580   : > { %v936_v32 = vpop.f32.mrb[8].mxu0 }
 0x581   : > { %v937_v33 = vadd.f32 %v936_v32, %v887_v31  ;;  %v1358_v34 = vpop.f32.mrb[9].mxu0 }
 0x582   : > { %v939_v36 = vpop.f32.mrb[10].mxu0 }
 0x583   : > { %v943_v37 = vmax.f32 %v937_v33, 0.0  ;;  %v940_v38 = vadd.f32 %v939_v36, %v892_v35  ;;  %v1359_v39 = vpop.f32.mrb[11].mxu0 }
 0x585   : > { %v945_v41 = vadd.f32 %v943_v37, %v1745_v62  ;;  %v944_v42 = vmax.f32 %v940_v38, 0.0 }
 0x587   : > { %v947_v43 = vmax.f32 %v945_v41, 0.0  ;;  %v946_v44 = vadd.f32 %v944_v42, %v1752_v1  ;;  %v959_v1 = vld [vmem:[%s1929_s14 + $0x8] sm:$0xff] }
 0x589   : > { %1289 = vst.msk [vmem:[%s1747_s18 + $0x10] sm:$0xff] %vm785_vm10, %v947_v43  ;;  %v948_v45 = vmax.f32 %v946_v44, 0.0 }
 0x58b   : > { %1290 = vst.msk [vmem:[%s1747_s18 + $0x18] sm:$0xff] %vm785_vm10, %v948_v45  ;;  %v960_v46 = vpack.c.bf16 %v948_v45, %v947_v43 }
 0x58d   : > { %962 = vrot.lane.b32.xlu1 %v960_v46, %s1523_s30 }
 0x591   : > { %985 = vperm.xlu1 %1442, %v955_v47  }
 0x595   : > { %1049 = vperm.xlu1 %1442, %v958_v48  }
 0x5ff   : > { %v963_v52 = vpop.permute.xlu1 %962 }
 0x600   : > { %v965_v53 = vsel %vm733_vm7, 0, %v963_v52 }
 0x601   : > { %v977_v54 = vsel %vm1817_vm1, %v965_v53, 0 }
 0x602   : > { %1361 = vmatpush3.bf16.msra.mxu1 %v977_v54 }
 0x603   : > { %1362 = vmatprep.subr.bf16.mxu1 %v1518_v0 }
 0x606   : > { %1363 = vmatpush3.bf16.msra.mxu1 %v960_v46 }
 0x609   : > { %1365 = vmatmul.mubr.msk.bf16.vlgmr.msra.gmra.mrb[8].mxu1 %vm667_vm9, %v1448_v11 }
 0x610   : > { %v986_v57 = vpop.permute.xlu1 %985 }
 0x614   : > { %v1050_v7 = vpop.permute.xlu1 %1049 }
 0x6dc   : > { %v1030_v40 = vpop.f32.mrb[8].mxu1 }
 0x6dd   : > { %v1031_v55 = vadd.f32 %v1030_v40, %v981_v4  ;;  %v1366_v56 = vpop.f32.mrb[9].mxu1 }
 0x6de   : > { %v1033_v58 = vpop.f32.mrb[10].mxu1 }
 0x6df   : > { %v1034_v59 = vadd.f32 %v1033_v58, %v986_v57  ;;  %v1367_v60 = vpop.f32.mrb[11].mxu1  ;;  %v1037_v61 = vmax.f32 %v1031_v55, 0.0 }
 0x6e1   : > { %v1038_v62 = vmax.f32 %v1034_v59, 0.0 }
 0x6e3   : > { %v1039_v63 = vpack.c.bf16 %v1038_v62, %v1037_v61 }
 0x6e5   : > { %1041 = vrot.lane.b32.xlu0 %v1039_v63, %s1523_s30  ;;  %s1276_s30 = sshll.u32 %s1742_s17, 4 }
 0x6e6   : > { %s516_s28 = scalar_lea.vmem [#allocation2], %s1276_s30 }
 0x6e7   : > { %s1133_s19 = sshll.u32 %s516_s28, 4  ;;  %s1849_s19 = int_to_ptr.vmem [resolvable:$true] %s1133_s19 }
 0x6e8   : > { %s1450_s30 = scalar_lea.vmem %s1849_s19, 256  ;;  %p1457_p0 = scmp.lt.s32.totalorder %s1849_s19, %s1455_s23 }
 0x6e9   : > { %1054 = vperm.xlu0 %1441, %v959_v1   ;;  %p1451_p11 = scmp.ne.s32.totalorder %s1849_s19, %s1450_s30  ;;  %p1458_p1 = scmp.lt.s32.totalorder %s1456_s27, %s1450_s30 }
 0x6eb   : > { %p1452_p12 = pnand %p1451_p11, %p1657_p5  ;;  %p1459_p2 = por %p1458_p1, %p1457_p0 }
 0x6ed   : > { %p1453_p13 = pneg %p1452_p12 }
 0x6ef   : > { %p1460_p3 = pnand %p1459_p2, %p1453_p13 }
 0x757   : > { %v1042_v2 = vpop.permute.xlu0 %1041 }
 0x758   : > { %v1044_v3 = vsel %vm733_vm7, 0, %v1042_v2 }
 0x759   : > { %v1046_v5 = vsel %vm1817_vm1, %v1044_v3, 0 }
 0x75a   : > { %1369 = vmatpush3.bf16.msra.mxu0 %v1046_v5 }
 0x75b   : > { %1370 = vmatprep.subr.bf16.mxu0 %v1518_v0 }
 0x75e   : > { %1371 = vmatpush3.bf16.msra.mxu0 %v1039_v63 }
 0x761   : > { %1373 = vmatmul.mubr.msk.bf16.vlgmr.msra.gmra.mrb[12].mxu0 %vm667_vm9, %v1449_v6 }
 0x768   : > { %v1055_v12 = vpop.permute.xlu0 %1054 }
 0x834   : > { %v1099_v8 = vpop.f32.mrb[12].mxu0 }
 0x835   : > { %v1100_v9 = vadd.f32 %v1099_v8, %v1050_v7  ;;  %v1374_v10 = vpop.f32.mrb[13].mxu0 }
 0x836   : > { %v1102_v13 = vpop.f32.mrb[14].mxu0 }
 0x837   : > { %v1106_v14 = vmax.f32 %v1100_v9, 0.0  ;;  %v1103_v15 = vadd.f32 %v1102_v13, %v1055_v12  ;;  %v1375_v0 = vpop.f32.mrb[15].mxu0 }
 0x839   : > { %v1108_v16 = vadd.f32 %v1106_v14, %v947_v43  ;;  %v1107_v17 = vmax.f32 %v1103_v15, 0.0 }
 0x83b   : > { %v1110_v18 = vmax.f32 %v1108_v16, 0.0  ;;  %v1109_v19 = vadd.f32 %v1107_v17, %v948_v45 }
 0x83d   : > { %1112 = vst.msk [vmem:[%s516_s28] sm:$0xff] %vm785_vm10, %v1110_v18  ;;  %v1111_v20 = vmax.f32 %v1109_v19, 0.0 }
 0x83f   : > { %1113 = vst.msk [vmem:[%s516_s28 + $0x8] sm:$0xff] %vm785_vm10, %v1111_v20 }
 0x840   : > { %1463 = shalt.err (!%p1460_p3)
}
 0x841   : > { %s1464_s28 = scalar_lea.hbm %s1847_s29, 256  ;;  %s1468_s1 = scalar_lea.hbm %s1930_s15, 512 }
 0x842   : > { %p1465_p4 = scmp.ne.s32.totalorder %s1847_s29, %s1464_s28  ;;  %p1469_p9 = scmp.lt.u32.totalorder %s1847_s29, %s1930_s15 }
 0x843   : > { %p1470_p10 = scmp.lt.u32.totalorder %s1468_s1, %s1464_s28  ;;  %p1472_p12 = scmp.lt.u32.totalorder %s1464_s28, %s1847_s29 }
 0x844   : > { %p1466_p7 = pnand %p1465_p4, %p1657_p5 }
 0x845   : > { %p1471_p11 = por %p1470_p10, %p1469_p9 }
 0x846   : > { %p1467_p8 = pneg %p1466_p7 }
 0x847   : > { %p1473_p13 = por %p1472_p12, %p1471_p11 }
 0x849   : > { %p1474_p0 = pnand %p1473_p13, %p1467_p8 }
 0x84b   : > { %1477 = shalt.err (!%p1474_p0)
}
 0x84c   : > { %s1525_s30 = smov 128   ;;  %s1526_s27 = smov 8  }
 0x84d   : > { %s1959_s26 = scalar_lea.sflag [#allocation3], %s1742_s17  ;;  %s1120_s20 = scalar_lea.sflag [#allocation5], %s1742_s17 }
 0x84e   : > { %1376 = dma.vmem_to_hbm [thread:$0]  (%p1657_p5), %s1849_s19, 256, %s1847_s29, %s1959_s26, %s1525_s30, %s1525_s30, %s1526_s27  }
 0x84f   : > { %s1960_s2 = sshll.u32 %s1640_s25, 8  ;;  %s1165_s3 = sshll.u32 %s1747_s18, 4  ;;  %s1166_s3 = int_to_ptr.vmem [resolvable:$true] %s1165_s3 }
 0x850   : > { %s1148_s28 = scalar_lea.hbm %s1931_s16, %s1960_s2  ;;  %s1527_s4 = smov 256  }
 0x851   : > { %1377 = sst [smem:[#allocation7]] (%p1657_p5), %s1527_s4  ;;  %s1528_s17 = smov 512  }
 0x852   : > { %1378 = sst [smem:[#allocation7 + $0x1]] (%p1657_p5), %s1528_s17  ;;  %s1529_s25 = smov 2  }
 0x853   : > { %1379 = sst [smem:[#allocation7 + $0x2]] (%p1657_p5), %s1529_s25  ;;  %s1530_s19 = smov 128  }
 0x854   : > { %1380 = sst [smem:[#allocation7 + $0x3]] (%p1657_p5), %s1530_s19  ;;  %s1531_s29 = smov 8  }
 0x855   : > { %1381 = sst [smem:[#allocation7 + $0x4]] (%p1657_p5), %s1530_s19  ;;  %s1532_s30 = smov [#allocation6]  }
 0x856   : > { %1382 = sst [smem:[#allocation7 + $0x5]] (%p1657_p5), %s1531_s29  ;;  %s1533_s18 = smov 0  }
 0x857   : > { %1383 = dma.general (%p1657_p5), %s1166_s3, 512, %s1148_s28, %s1120_s20, %s1532_s30, [#allocation7], %s1533_s18, 0  }
 0x858 PF: > { %p1393_p1 = scmp.ge.s32.totalorder %s1516_s24, 2  ;;  %s1193_s27 = sand.u32 1, %s1504_s21  }
 0x859   : > { %s1194_s26 = scalar_lea.sflag [#allocation3], %s1193_s27 }
 0x85a   : > { %p1387_p2 = pnand %p1393_p1, %p1661_p6 }
 0x85c   : > { %1495 = dma.done.wait (!%p1387_p2), %s1194_s26, 256  }
 0x85d   : > { %1497 = vsyncadd (!%p1387_p2), %s1194_s26, 4294967040  ;;  %s1203_s2 = scalar_lea.sflag [#allocation5], %s1193_s27 }
 0x85e   : > { %1499 = dma.done.wait (!%p1387_p2), %s1203_s2, 512  }
 0x85f   : > { %1501 = vsyncadd (!%p1387_p2), %s1203_s2, 4294966784  ;;  %s1962_s24 = sld [smem:[#allocation11_spill]]  ;;  %s1963_s23 = sld [smem:[#allocation10_spill]] }
 0x860   : > { %s1964_s1 = sld [smem:[#allocation12_spill]]  ;;  %s1965_s21 = smov %s1508_s22 }
 0x865   : > { %p30_p5 = scmp.ge.s32.totalorder %s1962_s24, 4   ;;  %s1966_s22 = smov %s1963_s23 }
 0x866   : > { %s1967_s23 = smov %s1964_s1 }
 0x867   :  { %32 = sbr.rel (!%p30_p5) target bundleno = 11 (0xb), region = 138 }
 0x86e   :  { %1208 = vsyncpa [#allocation3], 1 }
 0x86f   :  { %1210 = vsyncpa [#allocation3 + $0x1], 1 }
 0x870   :  { %1211 = vsyncpa [#allocation5], 1 }
 0x871   :  { %1213 = vsyncpa [#allocation5 + $0x1], 1 }

</bundles_post_ra>
